<compile_context>
chip_gen: v7x
topology: tpu7x:2x2x1
jax: 0.10.0
libtpu: 0.0.40
codegen_flags: <defaults>
</compile_context>

<pallas_src>
import jax
import jax.numpy as jnp
from jax.experimental import pallas as pl
from jax.experimental.pallas import tpu as pltpu

MARGIN = 0.5
SCALE = 30.0
EPS = 1e-12
_LANES = 128


def _vmem_budget_bytes():
    """Scoped-VMEM budget: half the physical VMEM (=> 64 MiB on v5e/v6e,
    32 MiB on v7x), 32 MiB if the hardware query is unavailable."""
    try:
        phys = int(getattr(pltpu.get_tpu_info(), "vmem_capacity_bytes", 0))
    except Exception:
        phys = 0
    if phys <= 0:
        phys = 64 * 1024 * 1024            # conservative default (v7x per-TC)
    return int(min(max(phys // 2, 32 * 1024 * 1024), 96 * 1024 * 1024))


def _choose_block_c(n, c, itemsize, budget):
    """Largest multiple-of-128 class tile whose double-buffered input DMA fits
    the VMEM budget next to the resident (N,128) buffers, capped at ~8 MiB per
    tile (plenty to amortize the ~0.35 us/grid-step overhead)."""
    if c <= _LANES:
        return c                                      # single full-width tile
    # Resident extras: (N,128) i32 target + two (N,128) f32 accumulators,
    # counted with 2x buffering to be safe.
    extras = 6 * n * _LANES * 4
    avail = max(budget - extras - (2 << 20), budget // 4)
    cols = avail // (2 * n * itemsize)                # double-buffered input
    cols = min(cols, (8 << 20) // (n * itemsize))     # <= ~8 MiB per tile
    cols = max((cols // _LANES) * _LANES, _LANES)
    return min(cols, (c // _LANES) * _LANES)


def additive_margin_softmax(predicted, target, *, block_c=None, num_splits=None,
                            margin=MARGIN, scale=SCALE):
    """predicted: (N, C) float, target: (N,) int -> scalar float32 loss."""
    n, c = predicted.shape
    itemsize = jnp.dtype(predicted.dtype).itemsize
    budget = _vmem_budget_bytes()

    if block_c is None:
        block_c = _choose_block_c(n, c, itemsize, budget)
    block_c = min(block_c, c)
    if block_c != c and block_c % _LANES != 0:
        raise ValueError("block_c must be a multiple of 128 or the full C dim")

    total_tiles = pl.cdiv(c, block_c)
    if num_splits is None:
        # Leading parallel split over C tiles; feeds both v7x TensorCores and
        # is a no-op-cost sequential loop on single-TC chips.
        num_splits = 2 if (total_tiles >= 2 and total_tiles % 2 == 0) else 1
    if num_splits < 1 or total_tiles % num_splits != 0:
        num_splits = 1
    tiles_per_split = total_tiles // num_splits

    use_partials = (block_c % _LANES == 0)     # lane-wise partial accumulation
    needs_pad_mask = (c % block_c != 0)        # only the globally last tile
    groups = block_c // _LANES if use_partials else 0

    tgt2d = target.astype(jnp.int32).reshape(n, 1)

    def kernel(pred_ref, tgt_ref, s_acc_ref, j_acc_ref):
        sp = pl.program_id(0)      # C split        ("parallel")
        tt = pl.program_id(1)      # tile in split  ("arbitrary" / reduction)

        @pl.when(tt == 0)
        def _init():
            s_acc_ref[...] = jnp.zeros_like(s_acc_ref)
            j_acc_ref[...] = jnp.zeros_like(j_acc_ref)

        x = pred_ref[...].astype(jnp.float32)                  # (N, block_c)
        col_start = (sp * tiles_per_split + tt) * block_c      # scalar

        # Column-wise L2 norm over the full batch (N untiled => exact), SCALE
        # folded in.  The divide is only a (1, block_c) slab, so it is kept
        # exact: pl.reciprocal(approx=True) would move it to the EUP but its
        # error is amplified by exp(s*x) and risks the 2e-4 tolerance.
        col_norm = jnp.sqrt(jnp.sum(x * x, axis=0, keepdims=True))
        xs = x * (scale / (col_norm + EPS))                     # s * x_normed

        # Local iota vs scalar-shifted target: no global-column add per tile.
        lidx = jax.lax.broadcasted_iota(jnp.int32, (n, block_c), 1)
        tmask = lidx == (tgt_ref[...] - col_start)              # (N, block_c)
        exp_all = jnp.exp(xs)

        if use_partials:
            # Lane-wise partial sums: plain vreg adds (VPU) instead of two
            # cross-lane XLU reductions per tile.  Final 128->1 reduce happens
            # once, in the JAX epilogue.
            def lanewise(v):
                out = v[:, 0:_LANES]
                for g in range(1, groups):
                    out = out + v[:, g * _LANES:(g + 1) * _LANES]
                return out

            s_acc_ref[...] += lanewise(jnp.where(tmask, xs, 0.0))

            if needs_pad_mask:
                is_last = jnp.logical_and(sp == num_splits - 1,
                                          tt == tiles_per_split - 1)

                @pl.when(jnp.logical_not(is_last))
                def _full_tile():                    # unmasked fast path
                    j_acc_ref[...] += lanewise(jnp.where(tmask, 0.0, exp_all))

                @pl.when(is_last)
                def _padded_tile():                  # mask padded columns
                    keep = jnp.logical_and(lidx < (c - col_start),
                                           jnp.logical_not(tmask))
                    j_acc_ref[...] += lanewise(jnp.where(keep, exp_all, 0.0))
            else:
                j_acc_ref[...] += lanewise(jnp.where(tmask, 0.0, exp_all))
        else:
            # Single full-width tile with C < 128: the two cross-lane
            # reductions run exactly once, so the XLU cost is irrelevant.
            s_row = jnp.sum(jnp.where(tmask, xs, 0.0), axis=1, keepdims=True)
            j_row = jnp.sum(jnp.where(tmask, 0.0, exp_all), axis=1,
                            keepdims=True)
            lane0 = jax.lax.broadcasted_iota(jnp.int32, (n, _LANES), 1) == 0
            s_acc_ref[...] += jnp.where(lane0, s_row, 0.0)
            j_acc_ref[...] += jnp.where(lane0, j_row, 0.0)

    acc_shape = jax.ShapeDtypeStruct((num_splits, n, _LANES), jnp.float32)
    acc_spec = pl.BlockSpec((None, n, _LANES), lambda s, t: (s, 0, 0))

    s_parts, j_parts = pl.pallas_call(
        kernel,
        out_shape=(acc_shape, acc_shape),
        grid_spec=pltpu.PrefetchScalarGridSpec(
            num_scalar_prefetch=0,
            grid=(num_splits, tiles_per_split),
            in_specs=[
                pl.BlockSpec((n, block_c),
                             lambda s, t: (0, s * tiles_per_split + t)),
                pl.BlockSpec((n, 1), lambda s, t: (0, 0)),  # resident target
            ],
            out_specs=[acc_spec, acc_spec],
        ),
        compiler_params=pltpu.CompilerParams(
            dimension_semantics=("parallel", "arbitrary"),
            vmem_limit_bytes=budget,
        ),
    )(predicted, tgt2d)

    # Tiny JAX epilogue: combine per-split / per-lane partials and finish in
    # log space:  -log(exp_s / (exp_s + sum_j + eps)) = log(denom) - s*(cos-m)
    s_cos = jnp.sum(s_parts, axis=(0, 2))            # (N,) = s * cos_theta_y
    sum_j = jnp.sum(j_parts, axis=(0, 2))            # (N,) non-target exp sum
    s_cos_m = s_cos - scale * margin
    loss_i = jnp.log(jnp.exp(s_cos_m) + sum_j + EPS) - s_cos_m
    return jnp.mean(loss_i)


def _reference(predicted, target):
    # Pure-JAX reference mirroring the PyTorch code line-by-line.
    x = predicted.astype(jnp.float32)
    x = x / (jnp.linalg.norm(x, axis=0) + EPS)
    n = x.shape[0]
    cos_y = x[jnp.arange(n), target]
    exp_s = jnp.exp(SCALE * (cos_y - MARGIN))
    sum_j = jnp.sum(jnp.exp(SCALE * x), axis=1) - jnp.exp(SCALE * cos_y)
    return jnp.mean(-jnp.log(exp_s / (exp_s + sum_j + EPS)))


if __name__ == "__main__":
    key = jax.random.PRNGKey(0)
    cases = [
        # (N, C, kwargs) — small shapes covering every code path:
        (8, 16, {}),                    # single tile, C < 128 (direct path)
        (8, 1024, {}),                  # single 128-multiple tile, lane partials
        (8, 300, {"block_c": 128}),     # multi-tile + padded last tile
        (8, 700, {"block_c": 128}),     # even tile count -> 2-way C split + pad
    ]
    for idx, (n, c, kw) in enumerate(cases):
        kp, kt = jax.random.split(jax.random.fold_in(key, idx))
        p = jax.random.normal(kp, (n, c), dtype=jnp.float32)
        t = jax.random.randint(kt, (n,), 0, c, dtype=jnp.int32)
        loss = additive_margin_softmax(p, t, **kw)
        jax.block_until_ready(loss)
        ref = _reference(p, t)
        assert jnp.allclose(loss, ref, rtol=2e-4, atol=1e-4), (n, c, loss, ref)
    print("KERNEL_OK")
</pallas_src>

<mosaic_0001>
module attributes {stable_mosaic.version = 11 : i64} {
  func.func @kernel(%arg0: i32, %arg1: i32, %arg2: memref<8x16xf32, #tpu.memory_space<vmem>>, %arg3: memref<8x1xi32, #tpu.memory_space<vmem>>, %arg4: memref<1x8x128xf32, #tpu.memory_space<vmem>>, %arg5: memref<1x8x128xf32, #tpu.memory_space<vmem>>) attributes {dimension_semantics = [#tpu.dimension_semantics<parallel>, #tpu.dimension_semantics<arbitrary>], iteration_bounds = array<i64: 1, 1>, scalar_prefetch = 0 : i64, scratch_operands = 0 : i64, tpu.core_type = #tpu.core_type<tc>, window_params = [{transform_indices = @transform_0, window_bounds = array<i64: 8, 16>}, {pipeline_mode = #tpu.pipeline_mode<synchronous>, transform_indices = @transform_1, window_bounds = array<i64: 8, 1>}, {transform_indices = @transform_2, window_bounds = array<i64: 1, 8, 128>}, {transform_indices = @transform_3, window_bounds = array<i64: 1, 8, 128>}]} {
    %c0_i32 = arith.constant 0 : i32
    %0 = arith.cmpi eq, %arg1, %c0_i32 : i32
    %1 = arith.extui %0 : i1 to i32
    %c0_i32_0 = arith.constant 0 : i32
    %2 = arith.cmpi ne, %1, %c0_i32_0 : i32
    scf.if %2 {
      %cst_25 = arith.constant 0.000000e+00 : f32
      %55 = vector.broadcast %cst_25 : f32 to vector<8x128xf32>
      %c0_26 = arith.constant 0 : index
      %c0_27 = arith.constant 0 : index
      %c0_28 = arith.constant 0 : index
      %56 = vector.load %arg4[%c0_26, %c0_27, %c0_28] : memref<1x8x128xf32, #tpu.memory_space<vmem>>, vector<1x8x128xf32>
      %57 = vector.shape_cast %56 : vector<1x8x128xf32> to vector<8x128xf32>
      %58 = vector.shape_cast %55 : vector<8x128xf32> to vector<1x8x128xf32>
      tpu.vector_store %arg4[%c0_26, %c0_27, %c0_28], %58 {strides = array<i32>} : memref<1x8x128xf32, #tpu.memory_space<vmem>>, vector<1x8x128xf32>,
      %cst_29 = arith.constant 0.000000e+00 : f32
      %59 = vector.broadcast %cst_29 : f32 to vector<8x128xf32>
      %c0_30 = arith.constant 0 : index
      %c0_31 = arith.constant 0 : index
      %c0_32 = arith.constant 0 : index
      %60 = vector.load %arg5[%c0_30, %c0_31, %c0_32] : memref<1x8x128xf32, #tpu.memory_space<vmem>>, vector<1x8x128xf32>
      %61 = vector.shape_cast %60 : vector<1x8x128xf32> to vector<8x128xf32>
      %62 = vector.shape_cast %59 : vector<8x128xf32> to vector<1x8x128xf32>
      tpu.vector_store %arg5[%c0_30, %c0_31, %c0_32], %62 {strides = array<i32>} : memref<1x8x128xf32, #tpu.memory_space<vmem>>, vector<1x8x128xf32>,
    } else {
    }
    %c0 = arith.constant 0 : index
    %c0_1 = arith.constant 0 : index
    %3 = vector.load %arg2[%c0, %c0_1] : memref<8x16xf32, #tpu.memory_space<vmem>>, vector<8x16xf32>
    %c1_i32 = arith.constant 1 : i32
    %4 = arith.muli %arg0, %c1_i32 : i32
    %5 = arith.addi %4, %arg1 : i32
    %c16_i32 = arith.constant 16 : i32
    %6 = arith.muli %5, %c16_i32 : i32
    %7 = arith.mulf %3, %3 : vector<8x16xf32>
    %cst = arith.constant dense<0.000000e+00> : vector<16xf32>
    %8 = vector.multi_reduction <add>, %7, %cst [0] : vector<8x16xf32> to vector<16xf32>
    %9 = vector.shape_cast %8 : vector<16xf32> to vector<1x16xf32>
    %10 = math.sqrt %9 : vector<1x16xf32>
    %cst_2 = arith.constant 9.99999996E-13 : f32
    %11 = vector.broadcast %cst_2 : f32 to vector<1x16xf32>
    %12 = arith.addf %10, %11 : vector<1x16xf32>
    %cst_3 = arith.constant 3.000000e+01 : f32
    %13 = vector.broadcast %cst_3 : f32 to vector<1x16xf32>
    %14 = arith.divf %13, %12 : vector<1x16xf32>
    %15 = vector.broadcast %14 : vector<1x16xf32> to vector<8x16xf32>
    %16 = arith.mulf %3, %15 : vector<8x16xf32>
    %17 = tpu.iota {dimensions = array<i32: 1>} : vector<8x16xi32>
    %c0_4 = arith.constant 0 : index
    %c0_5 = arith.constant 0 : index
    %18 = vector.load %arg3[%c0_4, %c0_5] : memref<8x1xi32, #tpu.memory_space<vmem>>, vector<8x1xi32>
    %19 = vector.broadcast %6 : i32 to vector<8x1xi32>
    %20 = arith.subi %18, %19 : vector<8x1xi32>
    %21 = vector.broadcast %20 : vector<8x1xi32> to vector<8x16xi32>
    %22 = arith.cmpi eq, %17, %21 : vector<8x16xi32>
    %23 = math.exp %16 : vector<8x16xf32>
    %cst_6 = arith.constant 0.000000e+00 : f32
    %24 = vector.broadcast %cst_6 : f32 to vector<8x16xf32>
    %25 = arith.select %22, %16, %24 : vector<8x16xi1>, vector<8x16xf32>
    %cst_7 = arith.constant dense<0.000000e+00> : vector<8xf32>
    %26 = vector.multi_reduction <add>, %25, %cst_7 [1] : vector<8x16xf32> to vector<8xf32>
    %27 = vector.shape_cast %26 : vector<8xf32> to vector<8x1xf32>
    %cst_8 = arith.constant 0.000000e+00 : f32
    %28 = vector.broadcast %cst_8 : f32 to vector<8x16xf32>
    %29 = arith.select %22, %28, %23 : vector<8x16xi1>, vector<8x16xf32>
    %cst_9 = arith.constant dense<0.000000e+00> : vector<8xf32>
    %30 = vector.multi_reduction <add>, %29, %cst_9 [1] : vector<8x16xf32> to vector<8xf32>
    %31 = vector.shape_cast %30 : vector<8xf32> to vector<8x1xf32>
    %32 = tpu.iota {dimensions = array<i32: 1>} : vector<8x128xi32>
    %c0_i32_10 = arith.constant 0 : i32
    %33 = vector.broadcast %c0_i32_10 : i32 to vector<8x128xi32>
    %34 = arith.cmpi eq, %32, %33 : vector<8x128xi32>
    %c0_11 = arith.constant 0 : index
    %c0_12 = arith.constant 0 : index
    %c0_13 = arith.constant 0 : index
    %35 = vector.load %arg4[%c0_11, %c0_12, %c0_13] : memref<1x8x128xf32, #tpu.memory_space<vmem>>, vector<1x8x128xf32>
    %36 = vector.shape_cast %35 : vector<1x8x128xf32> to vector<8x128xf32>
    %cst_14 = arith.constant 0.000000e+00 : f32
    %37 = vector.shape_cast %27 : vector<8x1xf32> to vector<8x1xf32>
    %38 = vector.broadcast %37 : vector<8x1xf32> to vector<8x128xf32>
    %39 = vector.broadcast %cst_14 : f32 to vector<8x128xf32>
    %40 = arith.select %34, %38, %39 : vector<8x128xi1>, vector<8x128xf32>
    %41 = arith.addf %36, %40 : vector<8x128xf32>
    %c0_15 = arith.constant 0 : index
    %c0_16 = arith.constant 0 : index
    %c0_17 = arith.constant 0 : index
    %42 = vector.load %arg4[%c0_15, %c0_16, %c0_17] : memref<1x8x128xf32, #tpu.memory_space<vmem>>, vector<1x8x128xf32>
    %43 = vector.shape_cast %42 : vector<1x8x128xf32> to vector<8x128xf32>
    %44 = vector.shape_cast %41 : vector<8x128xf32> to vector<1x8x128xf32>
    tpu.vector_store %arg4[%c0_15, %c0_16, %c0_17], %44 {strides = array<i32>} : memref<1x8x128xf32, #tpu.memory_space<vmem>>, vector<1x8x128xf32>,
    %c0_18 = arith.constant 0 : index
    %c0_19 = arith.constant 0 : index
    %c0_20 = arith.constant 0 : index
    %45 = vector.load %arg5[%c0_18, %c0_19, %c0_20] : memref<1x8x128xf32, #tpu.memory_space<vmem>>, vector<1x8x128xf32>
    %46 = vector.shape_cast %45 : vector<1x8x128xf32> to vector<8x128xf32>
    %cst_21 = arith.constant 0.000000e+00 : f32
    %47 = vector.shape_cast %31 : vector<8x1xf32> to vector<8x1xf32>
    %48 = vector.broadcast %47 : vector<8x1xf32> to vector<8x128xf32>
    %49 = vector.broadcast %cst_21 : f32 to vector<8x128xf32>
    %50 = arith.select %34, %48, %49 : vector<8x128xi1>, vector<8x128xf32>
    %51 = arith.addf %46, %50 : vector<8x128xf32>
    %c0_22 = arith.constant 0 : index
    %c0_23 = arith.constant 0 : index
    %c0_24 = arith.constant 0 : index
    %52 = vector.load %arg5[%c0_22, %c0_23, %c0_24] : memref<1x8x128xf32, #tpu.memory_space<vmem>>, vector<1x8x128xf32>
    %53 = vector.shape_cast %52 : vector<1x8x128xf32> to vector<8x128xf32>
    %54 = vector.shape_cast %51 : vector<8x128xf32> to vector<1x8x128xf32>
    tpu.vector_store %arg5[%c0_22, %c0_23, %c0_24], %54 {strides = array<i32>} : memref<1x8x128xf32, #tpu.memory_space<vmem>>, vector<1x8x128xf32>,
    return
  }
  func.func @transform_0(%arg0: i32, %arg1: i32) -> (i32, i32) {
    %c1_i32 = arith.constant 1 : i32
    %0 = arith.muli %arg0, %c1_i32 : i32
    %1 = arith.addi %0, %arg1 : i32
    %c0_i32 = arith.constant 0 : i32
    %c0_i32_0 = arith.constant 0 : i32
    return %c0_i32, %1 : i32, i32
  }
  func.func @transform_1(%arg0: i32, %arg1: i32) -> (i32, i32) {
    %c0_i32 = arith.constant 0 : i32
    %c0_i32_0 = arith.constant 0 : i32
    %c0_i32_1 = arith.constant 0 : i32
    return %c0_i32, %c0_i32_0 : i32, i32
  }
  func.func @transform_2(%arg0: i32, %arg1: i32) -> (i32, i32, i32) {
    %c0_i32 = arith.constant 0 : i32
    %c0_i32_0 = arith.constant 0 : i32
    %c0_i32_1 = arith.constant 0 : i32
    return %arg0, %c0_i32, %c0_i32_0 : i32, i32, i32
  }
  func.func @transform_3(%arg0: i32, %arg1: i32) -> (i32, i32, i32) {
    %c0_i32 = arith.constant 0 : i32
    %c0_i32_0 = arith.constant 0 : i32
    %c0_i32_1 = arith.constant 0 : i32
    return %arg0, %c0_i32, %c0_i32_0 : i32, i32, i32
  }
}

</mosaic_0001>

<bundles_post_ra>
// kernel: tpu_custom_call.1
= control target key start
LH: loop header
LB: loop body
LE: loop exit
PB: predicated region body
PF: predicated region fallthrough
CT: control target
= control target key end

     0   :  { %9 = vsyncpa [#allocation3], 0  ;;  %s238_s0 = inlined_call_operand.vmem [shape: f32[8,16], index: 0, kind: input, shape index: {}]   ;;  %s239_s1 = inlined_call_operand.vmem [shape: s32[8,1], index: 1, kind: input, shape index: {}]   ;;  %s240_s2 = inlined_call_operand.hbm [shape: f32[1,8,128], index: 2, kind: output, shape index: {0}]   ;;  %s241_s3 = inlined_call_operand.hbm [shape: f32[1,8,128], index: 3, kind: output, shape index: {1}]  }
   0x1   :  { %v63_v0 = vld [vmem:[%s239_s1] sm:$0xff] }
   0x2   :  { %10 = vsyncpa [#allocation5], 0  ;;  %v182_v1 = vmov 0   ;;  %v38_v2 = vld [vmem:[%s238_s0] sm:$0xff]  ;;  %vm42_vm0 = vcmask 130048   ;;  %v61_v21 = vlaneseq  ;;  %s183_s0 = smov [#allocation2]  }
   0x3   :  { %127 = vset.pattern.permute.xlu0 %v182_v1  ;;  %v41_v3 = vmul.f32 %v38_v2, %v38_v2  ;;  %s95_s1 = sshll.u32 %s183_s0, 4  ;;  %s184_s16 = smov [#allocation4]   ;;  %s96_s1 = int_to_ptr.vmem [resolvable:$true] %s95_s1 }
   0x4   :  { %67 = vperm.xlu0 %127, %v63_v0   ;;  %v62_v22 = vand.u32 127, %v61_v21  ;;  %s105_s17 = sshll.u32 %s184_s16, 4  ;;  %s134_s18 = scalar_lea.vmem %s96_s1, 128  ;;  %s106_s17 = int_to_ptr.vmem [resolvable:$true] %s105_s17 }
   0x5   :  { %v43_v4 = vsel %vm42_vm0, %v41_v3, 0.0  ;;  %p135_p0 = scmp.ne.s32.totalorder %s96_s1, %s134_s18  ;;  %p139_p1 = scmp.lt.s32.totalorder %s96_s1, %s96_s1 }
   0x6   :  { %v44_v5 = vrot.slane %v43_v4, 4  ;;  %vm80_vm4 = vcmp.eq.s32.totalorder %v62_v22, 0  ;;  %p140_p2 = scmp.lt.s32.totalorder %s134_s18, %s134_s18 }
   0x8   :  { %v45_v6 = vadd.f32 %v44_v5, %v43_v4  ;;  %p141_p3 = por %p140_p2, %p139_p1 }
   0xa   :  { %v46_v7 = vrot.slane %v45_v6, 2  ;;  %p142_p4 = pnand %p141_p3, %p135_p0 }
   0xc   :  { %v47_v8 = vadd.f32 %v46_v7, %v45_v6 }
   0xe   :  { %v48_v9 = vrot.slane %v47_v8, 1 }
  0x10   :  { %v49_v10 = vadd.f32 %v48_v9, %v47_v8 }
  0x12   :  { %128 = vrsqrt.f32 %v49_v10  ;;  %vm52_vm1 = vcmp.eq.f32.partialorder %v49_v10, inf  ;;  %v55_v13 = vand.u32 2147483648, %v49_v10  ;;  %vm54_vm2 = vcmp.eq.f32.partialorder %v49_v10, 0.0 }
  0x1c   :  { %v129_v11 = vpop.eup %128 }
  0x1d   :  { %v51_v12 = vmul.f32 %v129_v11, %v49_v10 }
  0x1f   :  { %v53_v14 = vsel %vm52_vm1, %v49_v10, %v51_v12 }
  0x20   :  { %v56_v15 = vsel %vm54_vm2, %v55_v13, %v53_v14 }
  0x21   :  { %v57_v16 = vadd.f32 1e-12, %v56_v15 }
  0x23   :  { %130 = vrcp.f32 %v57_v16 }
  0x2d   :  { %v131_v17 = vpop.eup %130 }
  0x2e   :  { %v59_v18 = vmul.f32 30.0, %v131_v17 }
  0x30   :  { %v60_v19 = vmul.f32 %v59_v18, %v38_v2 }
  0x32   :  { %v70_v20 = vmul.f32 1.442695, %v60_v19 }
  0x34   :  { %132 = vpow2.f32 %v70_v20 }
  0x3e   :  { %v133_v23 = vpop.eup %132 }
  0x83   :  { %v68_v24 = vpop.permute.xlu0 %67 }
  0x84   :  { %vm69_vm3 = vcmp.eq.s32.totalorder %v62_v22, %v68_v24 }
  0x85   :  { %v72_v25 = vsel %vm69_vm3, %v60_v19, 0.0  ;;  %v76_v26 = vsel %vm69_vm3, 0.0, %v133_v23 }
  0x86   :  { %v73_v27 = vsel %vm42_vm0, %v72_v25, 0.0  ;;  %v77_v28 = vsel %vm42_vm0, %v76_v26, 0.0 }
  0x87   :  { %74 = vadd.xlane.f32.xlu0 %v73_v27  ;;  %78 = vadd.xlane.f32.xlu1 %v77_v28 }
 0x114   :  { %v75_v29 = vpop.xlane.xlu0 %74  ;;  %v79_v30 = vpop.xlane.xlu1 %78 }
 0x115   :  { %v82_v31 = vsel %vm80_vm4, %v75_v29, 0.0  ;;  %v86_v32 = vsel %vm80_vm4, %v79_v30, 0.0 }
 0x116   :  { %84 = vst [vmem:[#allocation2] sm:$0xff] %v82_v31  ;;  %88 = vst [vmem:[#allocation4] sm:$0xff] %v86_v32 }
 0x117   :  { %145 = shalt.err (!%p142_p4)
}
 0x118   :  { %s146_s21 = scalar_lea.hbm %s240_s2, 128 }
 0x119   :  { %p147_p5 = scmp.ne.s32.totalorder %s240_s2, %s146_s21  ;;  %p150_p6 = scmp.lt.u32.totalorder %s146_s21, %s240_s2 }
 0x11b   :  { %p152_p7 = pnand %p150_p6, %p147_p5 }
 0x11d   :  { %155 = shalt.err (!%p152_p7)
}
 0x11e   :  { %98 = dma.vmem_to_hbm [thread:$0]  %s96_s1, 128, %s240_s2, [#allocation3]  }
 0x11f   :  { %s156_s28 = scalar_lea.vmem %s106_s17, 128  ;;  %p161_p9 = scmp.lt.s32.totalorder %s106_s17, %s106_s17 }
 0x120   :  { %p157_p8 = scmp.ne.s32.totalorder %s106_s17, %s156_s28  ;;  %p162_p10 = scmp.lt.s32.totalorder %s156_s28, %s156_s28 }
 0x122   :  { %p163_p11 = por %p162_p10, %p161_p9 }
 0x124   :  { %p164_p12 = pnand %p163_p11, %p157_p8 }
 0x126   :  { %167 = shalt.err (!%p164_p12)
}
 0x127   :  { %s168_s4 = scalar_lea.hbm %s241_s3, 128 }
 0x128   :  { %p169_p13 = scmp.ne.s32.totalorder %s241_s3, %s168_s4  ;;  %p172_p0 = scmp.lt.u32.totalorder %s168_s4, %s241_s3 }
 0x12a   :  { %p174_p1 = pnand %p172_p0, %p169_p13 }
 0x12c   :  { %177 = shalt.err (!%p174_p1)
}
 0x12d   :  { %108 = dma.vmem_to_hbm [thread:$0]  %s106_s17, 128, %s241_s3, [#allocation5]  }
 0x12e   :  { %178 = dma.done.wait [#allocation3], 128  }
 0x12f   :  { %179 = vsyncadd [#allocation3], 4294967168 }
 0x130   :  { %180 = dma.done.wait [#allocation5], 128  }
 0x131   :  { %181 = vsyncadd [#allocation5], 4294967168 }
 0x132   :  { %115 = vsyncpa [#allocation3], 1 }
 0x133   :  { %116 = vsyncpa [#allocation5], 1 }

</bundles_post_ra>
